<compile_context>
chip_gen: v7x
topology: tpu7x:2x2x1
jax: 0.10.0
libtpu: 0.0.40
codegen_flags: <defaults>
</compile_context>

<pallas_src>
import functools

import jax
import jax.numpy as jnp
from jax.experimental import pallas as pl
from jax.experimental.pallas import tpu as pltpu

BN_EPS = 1e-5
_VMEM_FLOOR = 16 * 1024 * 1024
_VMEM_CAP = 48 * 1024 * 1024  # leaves headroom under v7x's 64 MiB physical VMEM


# ---------------------------------------------------------------------------
# small helpers
# ---------------------------------------------------------------------------
def _round_up(x, m):
    return ((x + m - 1) // m) * m


def _pick_tile(dim, target):
    """Largest divisor of `dim` that is a multiple of 128 and <= target; else the full dim.
    Dims are padded to multiples of 128, so this always finds a 128-multiple tile."""
    cand = (min(target, dim) // 128) * 128
    while cand >= 128:
        if dim % cand == 0:
            return cand
        cand -= 128
    return dim


def _batch_tile(B):
    """Batch tile (multiple of 16 for bf16 sublane packing) and padded batch size."""
    if B <= 256:
        tm = _round_up(B, 16)
        return tm, tm
    return 256, _round_up(B, 256)  # full MXU row occupancy on v6e/v7x


def _clamp_vmem(nbytes):
    return int(min(max(nbytes, _VMEM_FLOOR), _VMEM_CAP))


def _tiled_vmem_limit(tm, tn, tk, out_itemsize):
    x_t = tm * tk * 2          # bf16 activation tile
    w_t = tk * tn * 2          # bf16 weight tile
    b_t = tn * 4               # f32 bias tile
    o_t = tm * tn * out_itemsize
    acc = tm * tn * 4
    need = 2 * (x_t + w_t + b_t + o_t) + acc  # double-buffered in/out + scratch
    return _clamp_vmem(3 * need + (4 << 20))  # headroom for Mosaic internals


def _middle_vmem_limit(tm, h_dim, layers, latent_pad, hdec_dim):
    w_bytes = sum(w.size * 2 + b.size * 4 for w, b in layers)
    acts = tm * (h_dim + latent_pad + hdec_dim + sum(w.shape[1] for w, _ in layers)) * 4
    io = tm * h_dim * 2 + tm * latent_pad * 4 + tm * hdec_dim * 2
    need = 2 * (w_bytes + io) + acts
    return _clamp_vmem(3 * need + (4 << 20))


# ---------------------------------------------------------------------------
# Kernel 1/3: tiled linear  y = maybe_relu(x @ W + b)   (the two big layers)
# grid = (M, N, K); M and N "parallel" (megacore / v7x second TC), K "arbitrary" (reduction)
# ---------------------------------------------------------------------------
def _tiled_linear_kernel(x_ref, w_ref, b_ref, o_ref, acc_ref, *, relu):
    k = pl.program_id(2)

    @pl.when(k == 0)
    def _():
        acc_ref[...] = jnp.zeros_like(acc_ref)

    # bf16 x bf16 on the MXU, f32 accumulation.
    acc_ref[...] += jnp.dot(x_ref[...], w_ref[...], preferred_element_type=jnp.float32)

    @pl.when(k == pl.num_programs(2) - 1)
    def _():
        y = acc_ref[...] + b_ref[...]  # bias (+ folded BN) applied once per output tile
        if relu:
            y = jnp.maximum(y, 0.0)
        o_ref[...] = y.astype(o_ref.dtype)


def tiled_linear(x, w, b, *, relu, out_dtype, tm, tn_target=512, tk_target=1024):
    """x:(B,K) bf16 (padded), w:(K,N) bf16 (BN folded, padded), b:(1,N) f32 -> (B,N)."""
    B, K = x.shape
    Kw, N = w.shape
    assert K == Kw and B % tm == 0
    tn = _pick_tile(N, tn_target)
    tk = _pick_tile(K, tk_target)
    kernel = functools.partial(_tiled_linear_kernel, relu=relu)
    return pl.pallas_call(
        kernel,
        out_shape=jax.ShapeDtypeStruct((B, N), out_dtype),
        grid=(B // tm, N // tn, K // tk),  # reduction axis (K) last
        in_specs=[
            pl.BlockSpec((tm, tk), lambda i, j, k: (i, k)),
            pl.BlockSpec((tk, tn), lambda i, j, k: (k, j)),
            pl.BlockSpec((1, tn), lambda i, j, k: (0, j)),
        ],
        out_specs=pl.BlockSpec((tm, tn), lambda i, j, k: (i, j)),
        scratch_shapes=[pltpu.VMEM((tm, tn), jnp.float32)],
        compiler_params=pltpu.CompilerParams(
            dimension_semantics=("parallel", "parallel", "arbitrary"),
            vmem_limit_bytes=_tiled_vmem_limit(tm, tn, tk, jnp.dtype(out_dtype).itemsize),
        ),
    )(x, w, b)


# ---------------------------------------------------------------------------
# Kernel 2/3: fused "middle" of the network (all small layers in one launch),
# gridded over batch so VMEM per block is bounded and both v7x TCs get work.
#   enc hidden[1:] -> latent head -> decoder hidden layers
# ---------------------------------------------------------------------------
def _fused_middle_kernel(*refs, n_enc_mid, n_dec):
    n_pairs = n_enc_mid + 1 + n_dec
    h_ref = refs[0]
    wb = refs[1 : 1 + 2 * n_pairs]
    latent_ref = refs[1 + 2 * n_pairs]
    hdec_ref = refs[2 + 2 * n_pairs]

    def lin(a_bf16, w_ref, b_ref, relu):
        y = jnp.dot(a_bf16, w_ref[...], preferred_element_type=jnp.float32) + b_ref[...]
        return jnp.maximum(y, 0.0) if relu else y

    a = h_ref[...]  # bf16, VMEM-resident for the whole chain
    i = 0
    for _ in range(n_enc_mid):            # remaining encoder hidden layers (BN folded + ReLU)
        a = lin(a, wb[i], wb[i + 1], True).astype(jnp.bfloat16)
        i += 2
    latent = lin(a, wb[i], wb[i + 1], False)   # latent head: plain Linear (f32 out)
    i += 2
    latent_ref[...] = latent.astype(latent_ref.dtype)
    d = latent.astype(jnp.bfloat16)
    for _ in range(n_dec):                # decoder hidden layers (BN folded + ReLU)
        d = lin(d, wb[i], wb[i + 1], True).astype(jnp.bfloat16)
        i += 2
    hdec_ref[...] = d.astype(hdec_ref.dtype)


def fused_middle(h, enc_mid, latent_head, dec_hidden, *, tm):
    B, d_h = h.shape
    assert B % tm == 0
    assert len(dec_hidden) >= 1, "decoder must have at least one hidden layer"
    latent_pad = latent_head[0].shape[1]
    hdec_dim = dec_hidden[-1][0].shape[1]

    layers = list(enc_mid) + [latent_head] + list(dec_hidden)
    flat, w_specs = [], []
    for w, b in layers:
        flat += [w, b]
        # full-extent blocks, constant index map -> DMA'd once, resident across grid steps
        w_specs += [pl.BlockSpec(w.shape, lambda i: (0, 0)),
                    pl.BlockSpec(b.shape, lambda i: (0, 0))]

    kernel = functools.partial(
        _fused_middle_kernel, n_enc_mid=len(enc_mid), n_dec=len(dec_hidden)
    )
    return pl.pallas_call(
        kernel,
        out_shape=(
            jax.ShapeDtypeStruct((B, latent_pad), jnp.float32),
            jax.ShapeDtypeStruct((B, hdec_dim), jnp.bfloat16),
        ),
        grid=(B // tm,),
        in_specs=[pl.BlockSpec((tm, d_h), lambda i: (i, 0))] + w_specs,
        out_specs=(
            pl.BlockSpec((tm, latent_pad), lambda i: (i, 0)),
            pl.BlockSpec((tm, hdec_dim), lambda i: (i, 0)),
        ),
        compiler_params=pltpu.CompilerParams(
            dimension_semantics=("parallel",),
            vmem_limit_bytes=_middle_vmem_limit(tm, d_h, layers, latent_pad, hdec_dim),
        ),
    )(h, *flat)


# ---------------------------------------------------------------------------
# Parameters (mirrors GeneExpressionAutoencoder.__init__ / _init_weights, eval mode)
# ---------------------------------------------------------------------------
def xavier_uniform(key, fan_in, fan_out):
    limit = jnp.sqrt(6.0 / (fan_in + fan_out))
    return jax.random.uniform(key, (fan_in, fan_out), jnp.float32, -limit, limit)


def _fold_bn(w, b, gamma=None, beta=None, mean=None, var=None):
    """Fold eval-mode BatchNorm1d into the preceding Linear."""
    n = w.shape[1]
    gamma = jnp.ones((n,), jnp.float32) if gamma is None else gamma
    beta = jnp.zeros((n,), jnp.float32) if beta is None else beta
    mean = jnp.zeros((n,), jnp.float32) if mean is None else mean
    var = jnp.ones((n,), jnp.float32) if var is None else var
    g = gamma / jnp.sqrt(var + BN_EPS)
    return w * g[None, :], (b - mean) * g + beta


def make_params(key, input_dim, latent_dim, hidden_dims):
    assert len(hidden_dims) >= 1
    n_linear = 2 * len(hidden_dims) + 2
    keys = iter(jax.random.split(key, n_linear))
    pad = lambda d: _round_up(d, 128)

    def make_linear(d_in, d_out, *, bn):
        w = xavier_uniform(next(keys), d_in, d_out)
        b = jnp.zeros((d_out,), jnp.float32)
        if bn:
            w, b = _fold_bn(w, b)
        # zero-pad to 128-multiples in f32, then cast weights to bf16; bias stays f32
        w_p = jnp.zeros((pad(d_in), pad(d_out)), jnp.float32).at[:d_in, :d_out].set(w)
        b_p = jnp.zeros((1, pad(d_out)), jnp.float32).at[0, :d_out].set(b)
        return (w_p.astype(jnp.bfloat16), b_p), (w, b.reshape(1, d_out))

    kernel, ref = {}, {}

    enc_k, enc_r, prev = [], [], input_dim
    for h in hidden_dims:
        kp_, rp_ = make_linear(prev, h, bn=True)
        enc_k.append(kp_); enc_r.append(rp_); prev = h
    kernel["enc_hidden"], ref["enc_hidden"] = enc_k, enc_r

    kernel["latent_head"], ref["latent_head"] = make_linear(prev, latent_dim, bn=False)
    prev = latent_dim

    dec_k, dec_r = [], []
    for h in reversed(hidden_dims):
        kp_, rp_ = make_linear(prev, h, bn=True)
        dec_k.append(kp_); dec_r.append(rp_); prev = h
    kernel["dec_hidden"], ref["dec_hidden"] = dec_k, dec_r

    kernel["dec_out"], ref["dec_out"] = make_linear(prev, input_dim, bn=False)
    return {"kernel": kernel, "ref": ref}


# ---------------------------------------------------------------------------
# Forward: returns (reconstructed, latent) like the PyTorch module
# ---------------------------------------------------------------------------
def autoencoder_forward(kparams, x, *, latent_dim):
    B, input_dim = x.shape
    enc = kparams["enc_hidden"]
    dec = kparams["dec_hidden"]

    w0, b0 = enc[0]
    input_pad = w0.shape[0]
    tm, B_pad = _batch_tile(B)

    # pad batch + features once, cast activations to bf16 in the wrapper (not per K step)
    x_p = jnp.pad(x, ((0, B_pad - B), (0, input_pad - input_dim))).astype(jnp.bfloat16)

    # big first encoder layer (tiled, pipelined, bf16 out feeds the fused middle)
    h = tiled_linear(x_p, w0, b0, relu=True, out_dtype=jnp.bfloat16, tm=tm)

    # everything small in one fused launch (activations stay in VMEM)
    latent_p, h_dec = fused_middle(h, enc[1:], kparams["latent_head"], dec, tm=tm)

    # big final decoder layer (tiled, f32 out)
    w_out, b_out = kparams["dec_out"]
    rec_p = tiled_linear(h_dec, w_out, b_out, relu=False, out_dtype=jnp.float32, tm=tm)

    return rec_p[:B, :input_dim], latent_p[:B, :latent_dim]


# pure-JAX f32 reference (unpadded, BN folded) for correctness validation
def reference_forward(rparams, x):
    h = x
    for w, b in rparams["enc_hidden"]:
        h = jnp.maximum(h @ w + b, 0.0)
    w, b = rparams["latent_head"]
    latent = h @ w + b
    d = latent
    for w, b in rparams["dec_hidden"]:
        d = jnp.maximum(d @ w + b, 0.0)
    w, b = rparams["dec_out"]
    return d @ w + b, latent


# ---------------------------------------------------------------------------
# main
# ---------------------------------------------------------------------------
if __name__ == "__main__":
    # Small shapes consistent with the module (input_dim=5000, hidden=[1000,200], latent=20
    # scaled down). Deliberately non-multiples of 128 to exercise the padding path
    # (500->512, 200->256, 100->128, 20->128, batch 4->16).
    batch = 4
    input_dim = 500
    hidden_dims = [200, 100]
    latent_dim = 20

    key = jax.random.PRNGKey(0)
    k_params, k_x = jax.random.split(key)

    params = make_params(k_params, input_dim, latent_dim, hidden_dims)
    x = jax.random.normal(k_x, (batch, input_dim), jnp.float32)

    fwd = jax.jit(functools.partial(autoencoder_forward, latent_dim=latent_dim))
    reconstructed, latent = fwd(params["kernel"], x)
    jax.block_until_ready((reconstructed, latent))

    assert reconstructed.shape == (batch, input_dim)
    assert latent.shape == (batch, latent_dim)
    assert bool(jnp.all(jnp.isfinite(reconstructed)))
    assert bool(jnp.all(jnp.isfinite(latent)))

    # validate against pure-JAX f32 reference (bf16 weights/activations -> loose tolerance)
    rec_ref, lat_ref = reference_forward(params["ref"], x)

    def rel_err(a, b):
        return float(jnp.linalg.norm(a - b) / (jnp.linalg.norm(b) + 1e-8))

    assert rel_err(reconstructed, rec_ref) < 5e-2
    assert rel_err(latent, lat_ref) < 5e-2

    print("KERNEL_OK")
</pallas_src>

<mosaic_0001>
module attributes {stable_mosaic.version = 11 : i64} {
  func.func @_tiled_linear_kernel(%arg0: i32, %arg1: i32, %arg2: i32, %arg3: memref<16x512xbf16, #tpu.memory_space<vmem>>, %arg4: memref<512x256xbf16, #tpu.memory_space<vmem>>, %arg5: memref<1x256xf32, #tpu.memory_space<vmem>>, %arg6: memref<16x256xbf16, #tpu.memory_space<vmem>>, %arg7: memref<16x256xf32, #tpu.memory_space<vmem>>) attributes {dimension_semantics = [#tpu.dimension_semantics<parallel>, #tpu.dimension_semantics<parallel>, #tpu.dimension_semantics<arbitrary>], iteration_bounds = array<i64: 1, 1, 1>, scalar_prefetch = 0 : i64, scratch_operands = 1 : i64, tpu.core_type = #tpu.core_type<tc>, window_params = [{transform_indices = @transform_0, window_bounds = array<i64: 16, 512>}, {transform_indices = @transform_1, window_bounds = array<i64: 512, 256>}, {transform_indices = @transform_2, window_bounds = array<i64: 1, 256>}, {transform_indices = @transform_3, window_bounds = array<i64: 16, 256>}]} {
    %c0_i32 = arith.constant 0 : i32
    %0 = arith.cmpi eq, %arg2, %c0_i32 : i32
    %1 = arith.extui %0 : i1 to i32
    %c0_i32_0 = arith.constant 0 : i32
    %2 = arith.cmpi ne, %1, %c0_i32_0 : i32
    scf.if %2 {
      %cst_10 = arith.constant 0.000000e+00 : f32
      %12 = vector.broadcast %cst_10 : f32 to vector<16x256xf32>
      %c0_11 = arith.constant 0 : index
      %c0_12 = arith.constant 0 : index
      %13 = vector.load %arg7[%c0_11, %c0_12] : memref<16x256xf32, #tpu.memory_space<vmem>>, vector<16x256xf32>
      tpu.vector_store %arg7[%c0_11, %c0_12], %12 {strides = array<i32>} : memref<16x256xf32, #tpu.memory_space<vmem>>, vector<16x256xf32>,
    } else {
    }
    %c0 = arith.constant 0 : index
    %c0_1 = arith.constant 0 : index
    %3 = vector.load %arg7[%c0, %c0_1] : memref<16x256xf32, #tpu.memory_space<vmem>>, vector<16x256xf32>
    %c0_2 = arith.constant 0 : index
    %c0_3 = arith.constant 0 : index
    %4 = vector.load %arg3[%c0_2, %c0_3] : memref<16x512xbf16, #tpu.memory_space<vmem>>, vector<16x512xbf16>
    %c0_4 = arith.constant 0 : index
    %c0_5 = arith.constant 0 : index
    %5 = vector.load %arg4[%c0_4, %c0_5] : memref<512x256xbf16, #tpu.memory_space<vmem>>, vector<512x256xbf16>
    %cst = arith.constant dense<0.000000e+00> : vector<16x256xf32>
    %6 = tpu.matmul %4, %5, %cst {dimension_numbers = #tpu.dot_dimension_numbers<[1], [0], [0], [1], [0, 0, 1, 1], [], []>} : vector<16x512xbf16>, vector<512x256xbf16>, vector<16x256xf32> -> vector<16x256xf32>
    %7 = arith.addf %3, %6 : vector<16x256xf32>
    %c0_6 = arith.constant 0 : index
    %c0_7 = arith.constant 0 : index
    %8 = vector.load %arg7[%c0_6, %c0_7] : memref<16x256xf32, #tpu.memory_space<vmem>>, vector<16x256xf32>
    tpu.vector_store %arg7[%c0_6, %c0_7], %7 {strides = array<i32>} : memref<16x256xf32, #tpu.memory_space<vmem>>, vector<16x256xf32>,
    %c0_i32_8 = arith.constant 0 : i32
    %9 = arith.cmpi eq, %arg2, %c0_i32_8 : i32
    %10 = arith.extui %9 : i1 to i32
    %c0_i32_9 = arith.constant 0 : i32
    %11 = arith.cmpi ne, %10, %c0_i32_9 : i32
    scf.if %11 {
      %c0_10 = arith.constant 0 : index
      %c0_11 = arith.constant 0 : index
      %12 = vector.load %arg7[%c0_10, %c0_11] : memref<16x256xf32, #tpu.memory_space<vmem>>, vector<16x256xf32>
      %c0_12 = arith.constant 0 : index
      %c0_13 = arith.constant 0 : index
      %13 = vector.load %arg5[%c0_12, %c0_13] : memref<1x256xf32, #tpu.memory_space<vmem>>, vector<1x256xf32>
      %14 = vector.broadcast %13 : vector<1x256xf32> to vector<16x256xf32>
      %15 = arith.addf %12, %14 : vector<16x256xf32>
      %cst_14 = arith.constant 0.000000e+00 : f32
      %16 = vector.broadcast %cst_14 : f32 to vector<16x256xf32>
      %17 = arith.maximumf %15, %16 : vector<16x256xf32>
      %18 = arith.truncf %17 : vector<16x256xf32> to vector<16x256xbf16>
      %c0_15 = arith.constant 0 : index
      %c0_16 = arith.constant 0 : index
      %19 = vector.load %arg6[%c0_15, %c0_16] : memref<16x256xbf16, #tpu.memory_space<vmem>>, vector<16x256xbf16>
      tpu.vector_store %arg6[%c0_15, %c0_16], %18 {strides = array<i32>} : memref<16x256xbf16, #tpu.memory_space<vmem>>, vector<16x256xbf16>,
    } else {
    }
    return
  }
  func.func @transform_0(%arg0: i32, %arg1: i32, %arg2: i32) -> (i32, i32) {
    %c0_i32 = arith.constant 0 : i32
    return %arg0, %arg2 : i32, i32
  }
  func.func @transform_1(%arg0: i32, %arg1: i32, %arg2: i32) -> (i32, i32) {
    %c0_i32 = arith.constant 0 : i32
    return %arg2, %arg1 : i32, i32
  }
  func.func @transform_2(%arg0: i32, %arg1: i32, %arg2: i32) -> (i32, i32) {
    %c0_i32 = arith.constant 0 : i32
    %c0_i32_0 = arith.constant 0 : i32
    return %c0_i32, %arg1 : i32, i32
  }
  func.func @transform_3(%arg0: i32, %arg1: i32, %arg2: i32) -> (i32, i32) {
    %c0_i32 = arith.constant 0 : i32
    return %arg0, %arg1 : i32, i32
  }
}

module attributes {stable_mosaic.version = 11 : i64} {
  func.func @_fused_middle_kernel(%arg0: i32, %arg1: memref<16x256xbf16, #tpu.memory_space<vmem>>, %arg2: memref<256x128xbf16, #tpu.memory_space<vmem>>, %arg3: memref<1x128xf32, #tpu.memory_space<vmem>>, %arg4: memref<128x128xbf16, #tpu.memory_space<vmem>>, %arg5: memref<1x128xf32, #tpu.memory_space<vmem>>, %arg6: memref<128x128xbf16, #tpu.memory_space<vmem>>, %arg7: memref<1x128xf32, #tpu.memory_space<vmem>>, %arg8: memref<128x256xbf16, #tpu.memory_space<vmem>>, %arg9: memref<1x256xf32, #tpu.memory_space<vmem>>, %arg10: memref<16x128xf32, #tpu.memory_space<vmem>>, %arg11: memref<16x256xbf16, #tpu.memory_space<vmem>>) attributes {dimension_semantics = [#tpu.dimension_semantics<parallel>], iteration_bounds = array<i64: 1>, scalar_prefetch = 0 : i64, scratch_operands = 0 : i64, tpu.core_type = #tpu.core_type<tc>, window_params = [{transform_indices = @transform_0, window_bounds = array<i64: 16, 256>}, {pipeline_mode = #tpu.pipeline_mode<synchronous>, transform_indices = @transform_1, window_bounds = array<i64: 256, 128>}, {pipeline_mode = #tpu.pipeline_mode<synchronous>, transform_indices = @transform_2, window_bounds = array<i64: 1, 128>}, {pipeline_mode = #tpu.pipeline_mode<synchronous>, transform_indices = @transform_3, window_bounds = array<i64: 128, 128>}, {pipeline_mode = #tpu.pipeline_mode<synchronous>, transform_indices = @transform_4, window_bounds = array<i64: 1, 128>}, {pipeline_mode = #tpu.pipeline_mode<synchronous>, transform_indices = @transform_5, window_bounds = array<i64: 128, 128>}, {pipeline_mode = #tpu.pipeline_mode<synchronous>, transform_indices = @transform_6, window_bounds = array<i64: 1, 128>}, {pipeline_mode = #tpu.pipeline_mode<synchronous>, transform_indices = @transform_7, window_bounds = array<i64: 128, 256>}, {pipeline_mode = #tpu.pipeline_mode<synchronous>, transform_indices = @transform_8, window_bounds = array<i64: 1, 256>}, {transform_indices = @transform_9, window_bounds = array<i64: 16, 128>}, {transform_indices = @transform_10, window_bounds = array<i64: 16, 256>}]} {
    %c0 = arith.constant 0 : index
    %c0_0 = arith.constant 0 : index
    %0 = vector.load %arg1[%c0, %c0_0] : memref<16x256xbf16, #tpu.memory_space<vmem>>, vector<16x256xbf16>
    %c0_1 = arith.constant 0 : index
    %c0_2 = arith.constant 0 : index
    %1 = vector.load %arg2[%c0_1, %c0_2] : memref<256x128xbf16, #tpu.memory_space<vmem>>, vector<256x128xbf16>
    %cst = arith.constant dense<0.000000e+00> : vector<16x128xf32>
    %2 = tpu.matmul %0, %1, %cst {dimension_numbers = #tpu.dot_dimension_numbers<[1], [0], [0], [1], [0, 0, 1, 1], [], []>} : vector<16x256xbf16>, vector<256x128xbf16>, vector<16x128xf32> -> vector<16x128xf32>
    %c0_3 = arith.constant 0 : index
    %c0_4 = arith.constant 0 : index
    %3 = vector.load %arg3[%c0_3, %c0_4] : memref<1x128xf32, #tpu.memory_space<vmem>>, vector<1x128xf32>
    %4 = vector.broadcast %3 : vector<1x128xf32> to vector<16x128xf32>
    %5 = arith.addf %2, %4 : vector<16x128xf32>
    %cst_5 = arith.constant 0.000000e+00 : f32
    %6 = vector.broadcast %cst_5 : f32 to vector<16x128xf32>
    %7 = arith.maximumf %5, %6 : vector<16x128xf32>
    %8 = arith.truncf %7 : vector<16x128xf32> to vector<16x128xbf16>
    %c0_6 = arith.constant 0 : index
    %c0_7 = arith.constant 0 : index
    %9 = vector.load %arg4[%c0_6, %c0_7] : memref<128x128xbf16, #tpu.memory_space<vmem>>, vector<128x128xbf16>
    %cst_8 = arith.constant dense<0.000000e+00> : vector<16x128xf32>
    %10 = tpu.matmul %8, %9, %cst_8 {dimension_numbers = #tpu.dot_dimension_numbers<[1], [0], [0], [1], [0, 0, 1, 1], [], []>} : vector<16x128xbf16>, vector<128x128xbf16>, vector<16x128xf32> -> vector<16x128xf32>
    %c0_9 = arith.constant 0 : index
    %c0_10 = arith.constant 0 : index
    %11 = vector.load %arg5[%c0_9, %c0_10] : memref<1x128xf32, #tpu.memory_space<vmem>>, vector<1x128xf32>
    %12 = vector.broadcast %11 : vector<1x128xf32> to vector<16x128xf32>
    %13 = arith.addf %10, %12 : vector<16x128xf32>
    %c0_11 = arith.constant 0 : index
    %c0_12 = arith.constant 0 : index
    %14 = vector.load %arg10[%c0_11, %c0_12] : memref<16x128xf32, #tpu.memory_space<vmem>>, vector<16x128xf32>
    tpu.vector_store %arg10[%c0_11, %c0_12], %13 {strides = array<i32>} : memref<16x128xf32, #tpu.memory_space<vmem>>, vector<16x128xf32>,
    %15 = arith.truncf %13 : vector<16x128xf32> to vector<16x128xbf16>
    %c0_13 = arith.constant 0 : index
    %c0_14 = arith.constant 0 : index
    %16 = vector.load %arg6[%c0_13, %c0_14] : memref<128x128xbf16, #tpu.memory_space<vmem>>, vector<128x128xbf16>
    %cst_15 = arith.constant dense<0.000000e+00> : vector<16x128xf32>
    %17 = tpu.matmul %15, %16, %cst_15 {dimension_numbers = #tpu.dot_dimension_numbers<[1], [0], [0], [1], [0, 0, 1, 1], [], []>} : vector<16x128xbf16>, vector<128x128xbf16>, vector<16x128xf32> -> vector<16x128xf32>
    %c0_16 = arith.constant 0 : index
    %c0_17 = arith.constant 0 : index
    %18 = vector.load %arg7[%c0_16, %c0_17] : memref<1x128xf32, #tpu.memory_space<vmem>>, vector<1x128xf32>
    %19 = vector.broadcast %18 : vector<1x128xf32> to vector<16x128xf32>
    %20 = arith.addf %17, %19 : vector<16x128xf32>
    %cst_18 = arith.constant 0.000000e+00 : f32
    %21 = vector.broadcast %cst_18 : f32 to vector<16x128xf32>
    %22 = arith.maximumf %20, %21 : vector<16x128xf32>
    %23 = arith.truncf %22 : vector<16x128xf32> to vector<16x128xbf16>
    %c0_19 = arith.constant 0 : index
    %c0_20 = arith.constant 0 : index
    %24 = vector.load %arg8[%c0_19, %c0_20] : memref<128x256xbf16, #tpu.memory_space<vmem>>, vector<128x256xbf16>
    %cst_21 = arith.constant dense<0.000000e+00> : vector<16x256xf32>
    %25 = tpu.matmul %23, %24, %cst_21 {dimension_numbers = #tpu.dot_dimension_numbers<[1], [0], [0], [1], [0, 0, 1, 1], [], []>} : vector<16x128xbf16>, vector<128x256xbf16>, vector<16x256xf32> -> vector<16x256xf32>
    %c0_22 = arith.constant 0 : index
    %c0_23 = arith.constant 0 : index
    %26 = vector.load %arg9[%c0_22, %c0_23] : memref<1x256xf32, #tpu.memory_space<vmem>>, vector<1x256xf32>
    %27 = vector.broadcast %26 : vector<1x256xf32> to vector<16x256xf32>
    %28 = arith.addf %25, %27 : vector<16x256xf32>
    %cst_24 = arith.constant 0.000000e+00 : f32
    %29 = vector.broadcast %cst_24 : f32 to vector<16x256xf32>
    %30 = arith.maximumf %28, %29 : vector<16x256xf32>
    %31 = arith.truncf %30 : vector<16x256xf32> to vector<16x256xbf16>
    %c0_25 = arith.constant 0 : index
    %c0_26 = arith.constant 0 : index
    %32 = vector.load %arg11[%c0_25, %c0_26] : memref<16x256xbf16, #tpu.memory_space<vmem>>, vector<16x256xbf16>
    tpu.vector_store %arg11[%c0_25, %c0_26], %31 {strides = array<i32>} : memref<16x256xbf16, #tpu.memory_space<vmem>>, vector<16x256xbf16>,
    return
  }
  func.func @transform_0(%arg0: i32) -> (i32, i32) {
    %c0_i32 = arith.constant 0 : i32
    %c0_i32_0 = arith.constant 0 : i32
    return %arg0, %c0_i32 : i32, i32
  }
  func.func @transform_1(%arg0: i32) -> (i32, i32) {
    %c0_i32 = arith.constant 0 : i32
    %c0_i32_0 = arith.constant 0 : i32
    %c0_i32_1 = arith.constant 0 : i32
    return %c0_i32, %c0_i32_0 : i32, i32
  }
  func.func @transform_2(%arg0: i32) -> (i32, i32) {
    %c0_i32 = arith.constant 0 : i32
    %c0_i32_0 = arith.constant 0 : i32
    %c0_i32_1 = arith.constant 0 : i32
    return %c0_i32, %c0_i32_0 : i32, i32
  }
  func.func @transform_3(%arg0: i32) -> (i32, i32) {
    %c0_i32 = arith.constant 0 : i32
    %c0_i32_0 = arith.constant 0 : i32
    %c0_i32_1 = arith.constant 0 : i32
    return %c0_i32, %c0_i32_0 : i32, i32
  }
  func.func @transform_4(%arg0: i32) -> (i32, i32) {
    %c0_i32 = arith.constant 0 : i32
    %c0_i32_0 = arith.constant 0 : i32
    %c0_i32_1 = arith.constant 0 : i32
    return %c0_i32, %c0_i32_0 : i32, i32
  }
  func.func @transform_5(%arg0: i32) -> (i32, i32) {
    %c0_i32 = arith.constant 0 : i32
    %c0_i32_0 = arith.constant 0 : i32
    %c0_i32_1 = arith.constant 0 : i32
    return %c0_i32, %c0_i32_0 : i32, i32
  }
  func.func @transform_6(%arg0: i32) -> (i32, i32) {
    %c0_i32 = arith.constant 0 : i32
    %c0_i32_0 = arith.constant 0 : i32
    %c0_i32_1 = arith.constant 0 : i32
    return %c0_i32, %c0_i32_0 : i32, i32
  }
  func.func @transform_7(%arg0: i32) -> (i32, i32) {
    %c0_i32 = arith.constant 0 : i32
    %c0_i32_0 = arith.constant 0 : i32
    %c0_i32_1 = arith.constant 0 : i32
    return %c0_i32, %c0_i32_0 : i32, i32
  }
  func.func @transform_8(%arg0: i32) -> (i32, i32) {
    %c0_i32 = arith.constant 0 : i32
    %c0_i32_0 = arith.constant 0 : i32
    %c0_i32_1 = arith.constant 0 : i32
    return %c0_i32, %c0_i32_0 : i32, i32
  }
  func.func @transform_9(%arg0: i32) -> (i32, i32) {
    %c0_i32 = arith.constant 0 : i32
    %c0_i32_0 = arith.constant 0 : i32
    return %arg0, %c0_i32 : i32, i32
  }
  func.func @transform_10(%arg0: i32) -> (i32, i32) {
    %c0_i32 = arith.constant 0 : i32
    %c0_i32_0 = arith.constant 0 : i32
    return %arg0, %c0_i32 : i32, i32
  }
}

module attributes {stable_mosaic.version = 11 : i64} {
  func.func @_tiled_linear_kernel(%arg0: i32, %arg1: i32, %arg2: i32, %arg3: memref<16x256xbf16, #tpu.memory_space<vmem>>, %arg4: memref<256x512xbf16, #tpu.memory_space<vmem>>, %arg5: memref<1x512xf32, #tpu.memory_space<vmem>>, %arg6: memref<16x512xf32, #tpu.memory_space<vmem>>, %arg7: memref<16x512xf32, #tpu.memory_space<vmem>>) attributes {dimension_semantics = [#tpu.dimension_semantics<parallel>, #tpu.dimension_semantics<parallel>, #tpu.dimension_semantics<arbitrary>], iteration_bounds = array<i64: 1, 1, 1>, scalar_prefetch = 0 : i64, scratch_operands = 1 : i64, tpu.core_type = #tpu.core_type<tc>, window_params = [{transform_indices = @transform_0, window_bounds = array<i64: 16, 256>}, {transform_indices = @transform_1, window_bounds = array<i64: 256, 512>}, {transform_indices = @transform_2, window_bounds = array<i64: 1, 512>}, {transform_indices = @transform_3, window_bounds = array<i64: 16, 512>}]} {
    %c0_i32 = arith.constant 0 : i32
    %0 = arith.cmpi eq, %arg2, %c0_i32 : i32
    %1 = arith.extui %0 : i1 to i32
    %c0_i32_0 = arith.constant 0 : i32
    %2 = arith.cmpi ne, %1, %c0_i32_0 : i32
    scf.if %2 {
      %cst_10 = arith.constant 0.000000e+00 : f32
      %12 = vector.broadcast %cst_10 : f32 to vector<16x512xf32>
      %c0_11 = arith.constant 0 : index
      %c0_12 = arith.constant 0 : index
      %13 = vector.load %arg7[%c0_11, %c0_12] : memref<16x512xf32, #tpu.memory_space<vmem>>, vector<16x512xf32>
      tpu.vector_store %arg7[%c0_11, %c0_12], %12 {strides = array<i32>} : memref<16x512xf32, #tpu.memory_space<vmem>>, vector<16x512xf32>,
    } else {
    }
    %c0 = arith.constant 0 : index
    %c0_1 = arith.constant 0 : index
    %3 = vector.load %arg7[%c0, %c0_1] : memref<16x512xf32, #tpu.memory_space<vmem>>, vector<16x512xf32>
    %c0_2 = arith.constant 0 : index
    %c0_3 = arith.constant 0 : index
    %4 = vector.load %arg3[%c0_2, %c0_3] : memref<16x256xbf16, #tpu.memory_space<vmem>>, vector<16x256xbf16>
    %c0_4 = arith.constant 0 : index
    %c0_5 = arith.constant 0 : index
    %5 = vector.load %arg4[%c0_4, %c0_5] : memref<256x512xbf16, #tpu.memory_space<vmem>>, vector<256x512xbf16>
    %cst = arith.constant dense<0.000000e+00> : vector<16x512xf32>
    %6 = tpu.matmul %4, %5, %cst {dimension_numbers = #tpu.dot_dimension_numbers<[1], [0], [0], [1], [0, 0, 1, 1], [], []>} : vector<16x256xbf16>, vector<256x512xbf16>, vector<16x512xf32> -> vector<16x512xf32>
    %7 = arith.addf %3, %6 : vector<16x512xf32>
    %c0_6 = arith.constant 0 : index
    %c0_7 = arith.constant 0 : index
    %8 = vector.load %arg7[%c0_6, %c0_7] : memref<16x512xf32, #tpu.memory_space<vmem>>, vector<16x512xf32>
    tpu.vector_store %arg7[%c0_6, %c0_7], %7 {strides = array<i32>} : memref<16x512xf32, #tpu.memory_space<vmem>>, vector<16x512xf32>,
    %c0_i32_8 = arith.constant 0 : i32
    %9 = arith.cmpi eq, %arg2, %c0_i32_8 : i32
    %10 = arith.extui %9 : i1 to i32
    %c0_i32_9 = arith.constant 0 : i32
    %11 = arith.cmpi ne, %10, %c0_i32_9 : i32
    scf.if %11 {
      %c0_10 = arith.constant 0 : index
      %c0_11 = arith.constant 0 : index
      %12 = vector.load %arg7[%c0_10, %c0_11] : memref<16x512xf32, #tpu.memory_space<vmem>>, vector<16x512xf32>
      %c0_12 = arith.constant 0 : index
      %c0_13 = arith.constant 0 : index
      %13 = vector.load %arg5[%c0_12, %c0_13] : memref<1x512xf32, #tpu.memory_space<vmem>>, vector<1x512xf32>
      %14 = vector.broadcast %13 : vector<1x512xf32> to vector<16x512xf32>
      %15 = arith.addf %12, %14 : vector<16x512xf32>
      %c0_14 = arith.constant 0 : index
      %c0_15 = arith.constant 0 : index
      %16 = vector.load %arg6[%c0_14, %c0_15] : memref<16x512xf32, #tpu.memory_space<vmem>>, vector<16x512xf32>
      tpu.vector_store %arg6[%c0_14, %c0_15], %15 {strides = array<i32>} : memref<16x512xf32, #tpu.memory_space<vmem>>, vector<16x512xf32>,
    } else {
    }
    return
  }
  func.func @transform_0(%arg0: i32, %arg1: i32, %arg2: i32) -> (i32, i32) {
    %c0_i32 = arith.constant 0 : i32
    return %arg0, %arg2 : i32, i32
  }
  func.func @transform_1(%arg0: i32, %arg1: i32, %arg2: i32) -> (i32, i32) {
    %c0_i32 = arith.constant 0 : i32
    return %arg2, %arg1 : i32, i32
  }
  func.func @transform_2(%arg0: i32, %arg1: i32, %arg2: i32) -> (i32, i32) {
    %c0_i32 = arith.constant 0 : i32
    %c0_i32_0 = arith.constant 0 : i32
    return %c0_i32, %arg1 : i32, i32
  }
  func.func @transform_3(%arg0: i32, %arg1: i32, %arg2: i32) -> (i32, i32) {
    %c0_i32 = arith.constant 0 : i32
    return %arg0, %arg1 : i32, i32
  }
}

</mosaic_0001>

<bundles_post_ra>
// kernel: autoencoder_forward.5
= control target key start
LH: loop header
LB: loop body
LE: loop exit
PB: predicated region body
PF: predicated region fallthrough
CT: control target
= control target key end

     0   :  { %s995_s1 = inlined_call_operand.vmem [shape: bf16[256,512], index: 1, kind: input, shape index: {}]   ;;  %s996_s0 = inlined_call_operand.vmem [shape: bf16[16,256], index: 0, kind: input, shape index: {}]   ;;  %s997_s2 = inlined_call_operand.vmem [shape: f32[1,512], index: 2, kind: input, shape index: {}]   ;;  %s998_s3 = inlined_call_operand.vmem [shape: f32[16,512], index: 3, kind: output, shape index: {}]  }
   0x1   :  { %v651_v0 = vld [vmem:[%s995_s1 + $0x4] ss:$16 sps:$4 sm:$0xff]   ;;  %v653_v1 = vld [vmem:[%s995_s1 + $0xc] ss:$16 sps:$4 sm:$0xff]   ;;  %v655_v2 = vld [vmem:[%s995_s1] ss:$16 sps:$4 sm:$0xff]  }
   0x2   :  { %430 = vmatprep.subr.bf16.mxu0 %v651_v0  ;;  %v656_v3 = vld [vmem:[%s995_s1 + $0x8] ss:$16 sps:$4 sm:$0xff]   ;;  %473 = vmatprep.subr.bf16.mxu1 %v653_v1  ;;  %v657_v4 = vld [vmem:[%s995_s1 + $0x24] ss:$16 sps:$4 sm:$0xff]   ;;  %v659_v5 = vld [vmem:[%s995_s1 + $0x2c] ss:$16 sps:$4 sm:$0xff]  }
   0x3   :  { %431 = vmatpush1.bf16.msra.mxu0 %v655_v2  ;;  %474 = vmatpush1.bf16.msra.mxu1 %v656_v3  ;;  %v661_v6 = vld [vmem:[%s995_s1 + $0x20] ss:$16 sps:$4 sm:$0xff]   ;;  %v662_v7 = vld [vmem:[%s995_s1 + $0x28] ss:$16 sps:$4 sm:$0xff]   ;;  %v663_v8 = vld [vmem:[%s995_s1 + $0x44] ss:$16 sps:$4 sm:$0xff]   ;;  %v545_v2 = vlaneseq }
   0x4   :  { %432 = vmatprep.subr.bf16.mxu0 %v657_v4  ;;  %475 = vmatprep.subr.bf16.mxu1 %v659_v5  ;;  %v665_v9 = vld [vmem:[%s995_s1 + $0x4c] ss:$16 sps:$4 sm:$0xff]   ;;  %v667_v10 = vld [vmem:[%s995_s1 + $0x40] ss:$16 sps:$4 sm:$0xff]   ;;  %v668_v11 = vld [vmem:[%s995_s1 + $0x48] ss:$16 sps:$4 sm:$0xff]  }
   0x5   :  { %v669_v12 = vld [vmem:[%s995_s1 + $0x64] ss:$16 sps:$4 sm:$0xff]   ;;  %v671_v13 = vld [vmem:[%s995_s1 + $0x6c] ss:$16 sps:$4 sm:$0xff]   ;;  %v673_v14 = vld [vmem:[%s995_s1 + $0x60] ss:$16 sps:$4 sm:$0xff]  }
   0x6   :  { %v674_v15 = vld [vmem:[%s995_s1 + $0x68] ss:$16 sps:$4 sm:$0xff]   ;;  %v675_v16 = vld [vmem:[%s995_s1 + $0x84] ss:$16 sps:$4 sm:$0xff]   ;;  %v677_v17 = vld [vmem:[%s995_s1 + $0x8c] ss:$16 sps:$4 sm:$0xff]  }
   0x7   :  { %433 = vmatpush1.bf16.msra.mxu0 %v661_v6  ;;  %476 = vmatpush1.bf16.msra.mxu1 %v662_v7  ;;  %v679_v18 = vld [vmem:[%s995_s1 + $0x80] ss:$16 sps:$4 sm:$0xff]   ;;  %v680_v19 = vld [vmem:[%s995_s1 + $0x88] ss:$16 sps:$4 sm:$0xff]   ;;  %v681_v20 = vld [vmem:[%s995_s1 + $0xa4] ss:$16 sps:$4 sm:$0xff]  }
   0x8   :  { %434 = vmatprep.subr.bf16.mxu0 %v663_v8  ;;  %477 = vmatprep.subr.bf16.mxu1 %v665_v9  ;;  %v683_v21 = vld [vmem:[%s995_s1 + $0xac] ss:$16 sps:$4 sm:$0xff]   ;;  %v685_v22 = vld [vmem:[%s995_s1 + $0xa0] ss:$16 sps:$4 sm:$0xff]   ;;  %v686_v23 = vld [vmem:[%s995_s1 + $0xa8] ss:$16 sps:$4 sm:$0xff]  }
   0x9   :  { %v687_v24 = vld [vmem:[%s995_s1 + $0xc4] ss:$16 sps:$4 sm:$0xff]   ;;  %v689_v25 = vld [vmem:[%s995_s1 + $0xcc] ss:$16 sps:$4 sm:$0xff]   ;;  %v691_v26 = vld [vmem:[%s995_s1 + $0xc0] ss:$16 sps:$4 sm:$0xff]  }
   0xa   :  { %v692_v27 = vld [vmem:[%s995_s1 + $0xc8] ss:$16 sps:$4 sm:$0xff]   ;;  %v693_v28 = vld [vmem:[%s995_s1 + $0xe4] ss:$16 sps:$4 sm:$0xff]   ;;  %v695_v29 = vld [vmem:[%s995_s1 + $0xec] ss:$16 sps:$4 sm:$0xff]  }
   0xb   :  { %435 = vmatpush1.bf16.msra.mxu0 %v667_v10  ;;  %478 = vmatpush1.bf16.msra.mxu1 %v668_v11  ;;  %v697_v30 = vld [vmem:[%s995_s1 + $0xe0] ss:$16 sps:$4 sm:$0xff]   ;;  %v698_v31 = vld [vmem:[%s995_s1 + $0xe8] ss:$16 sps:$4 sm:$0xff]   ;;  %v699_v32 = vld [vmem:[%s995_s1 + $0x104] ss:$16 sps:$4 sm:$0xff]  }
   0xc   :  { %436 = vmatprep.subr.bf16.mxu0 %v669_v12  ;;  %479 = vmatprep.subr.bf16.mxu1 %v671_v13  ;;  %v701_v33 = vld [vmem:[%s995_s1 + $0x10c] ss:$16 sps:$4 sm:$0xff]   ;;  %v703_v34 = vld [vmem:[%s995_s1 + $0x100] ss:$16 sps:$4 sm:$0xff]   ;;  %v704_v35 = vld [vmem:[%s995_s1 + $0x108] ss:$16 sps:$4 sm:$0xff]  }
   0xd   :  { %v705_v36 = vld [vmem:[%s995_s1 + $0x124] ss:$16 sps:$4 sm:$0xff]   ;;  %v707_v37 = vld [vmem:[%s995_s1 + $0x12c] ss:$16 sps:$4 sm:$0xff]   ;;  %v709_v38 = vld [vmem:[%s995_s1 + $0x120] ss:$16 sps:$4 sm:$0xff]  }
   0xe   :  { %v710_v39 = vld [vmem:[%s995_s1 + $0x128] ss:$16 sps:$4 sm:$0xff]   ;;  %v711_v40 = vld [vmem:[%s995_s1 + $0x144] ss:$16 sps:$4 sm:$0xff]   ;;  %v713_v41 = vld [vmem:[%s995_s1 + $0x14c] ss:$16 sps:$4 sm:$0xff]  }
   0xf   :  { %437 = vmatpush1.bf16.msra.mxu0 %v673_v14  ;;  %480 = vmatpush1.bf16.msra.mxu1 %v674_v15  ;;  %v715_v42 = vld [vmem:[%s995_s1 + $0x140] ss:$16 sps:$4 sm:$0xff]   ;;  %v716_v43 = vld [vmem:[%s995_s1 + $0x148] ss:$16 sps:$4 sm:$0xff]   ;;  %v717_v44 = vld [vmem:[%s995_s1 + $0x164] ss:$16 sps:$4 sm:$0xff]  }
  0x10   :  { %438 = vmatprep.subr.bf16.mxu0 %v675_v16  ;;  %481 = vmatprep.subr.bf16.mxu1 %v677_v17  ;;  %v719_v45 = vld [vmem:[%s995_s1 + $0x16c] ss:$16 sps:$4 sm:$0xff]   ;;  %v721_v47 = vld [vmem:[%s995_s1 + $0x160] ss:$16 sps:$4 sm:$0xff]   ;;  %v722_v48 = vld [vmem:[%s995_s1 + $0x168] ss:$16 sps:$4 sm:$0xff]  }
  0x11   :  { %v749_v46 = vld [vmem:[%s996_s0 + $0x4] ss:$8 sps:$4 sm:$0xff]   ;;  %v727_v51 = vld [vmem:[%s995_s1 + $0x180] ss:$16 sps:$4 sm:$0xff]   ;;  %v728_v52 = vld [vmem:[%s995_s1 + $0x188] ss:$16 sps:$4 sm:$0xff]  }
  0x12   :  { %v723_v49 = vld [vmem:[%s995_s1 + $0x184] ss:$16 sps:$4 sm:$0xff]   ;;  %v725_v50 = vld [vmem:[%s995_s1 + $0x18c] ss:$16 sps:$4 sm:$0xff]   ;;  %462 = vmatprep.mubr.bf16.mxu0 %v749_v46  ;;  %505 = vmatprep.mubr.bf16.mxu1 %v749_v46  ;;  %v733_v55 = vld [vmem:[%s995_s1 + $0x1a0] ss:$16 sps:$4 sm:$0xff]  }
  0x13   :  { %439 = vmatpush1.bf16.msra.mxu0 %v679_v18  ;;  %482 = vmatpush1.bf16.msra.mxu1 %v680_v19  ;;  %v729_v53 = vld [vmem:[%s995_s1 + $0x1a4] ss:$16 sps:$4 sm:$0xff]   ;;  %v731_v54 = vld [vmem:[%s995_s1 + $0x1ac] ss:$16 sps:$4 sm:$0xff]   ;;  %v734_v56 = vld [vmem:[%s995_s1 + $0x1a8] ss:$16 sps:$4 sm:$0xff]  }
  0x14   :  { %440 = vmatprep.subr.bf16.mxu0 %v681_v20  ;;  %483 = vmatprep.subr.bf16.mxu1 %v683_v21  ;;  %v735_v57 = vld [vmem:[%s995_s1 + $0x1c4] ss:$16 sps:$4 sm:$0xff]   ;;  %v737_v58 = vld [vmem:[%s995_s1 + $0x1cc] ss:$16 sps:$4 sm:$0xff]   ;;  %v739_v59 = vld [vmem:[%s995_s1 + $0x1c0] ss:$16 sps:$4 sm:$0xff]  }
  0x15   :  { %v740_v60 = vld [vmem:[%s995_s1 + $0x1c8] ss:$16 sps:$4 sm:$0xff]   ;;  %v741_v61 = vld [vmem:[%s995_s1 + $0x1e4] ss:$16 sps:$4 sm:$0xff]   ;;  %v743_v62 = vld [vmem:[%s995_s1 + $0x1ec] ss:$16 sps:$4 sm:$0xff]  }
  0x16   :  { %v745_v63 = vld [vmem:[%s995_s1 + $0x1e0] ss:$16 sps:$4 sm:$0xff]   ;;  %v746_v0 = vld [vmem:[%s995_s1 + $0x1e8] ss:$16 sps:$4 sm:$0xff]   ;;  %v546_v3 = vshrl.u32 %v545_v2, 7 }
  0x17   :  { %441 = vmatpush1.bf16.msra.mxu0 %v685_v22  ;;  %484 = vmatpush1.bf16.msra.mxu1 %v686_v23  ;;  %v747_v1 = vld [vmem:[%s996_s0] ss:$8 sps:$4 sm:$0xff]  }
  0x18   :  { %442 = vmatprep.subr.bf16.mxu0 %v687_v24  ;;  %485 = vmatprep.subr.bf16.mxu1 %v689_v25  ;;  %v547_v4 = vsub.s32 0, %v546_v3  ;;  %v555_v5 = vsub.s32 2, %v546_v3  ;;  %v543_v6 = vld [vmem:[%s997_s2] sm:$0xf]  ;;  %v551_v7 = vsub.s32 1, %v546_v3  ;;  %v559_v8 = vsub.s32 3, %v546_v3 }
  0x1a   :  { %v548_v9 = vrot.slane %v543_v6, %v547_v4  ;;  %v556_v10 = vrot.slane %v543_v6, %v555_v5  ;;  %v552_v11 = vrot.slane %v543_v6, %v551_v7  ;;  %v560_v12 = vrot.slane %v543_v6, %v559_v8 }
  0x1b   :  { %443 = vmatpush1.bf16.msra.mxu0 %v691_v26  ;;  %486 = vmatpush1.bf16.msra.mxu1 %v692_v27 }
  0x1c   :  { %444 = vmatprep.subr.bf16.mxu0 %v693_v28  ;;  %487 = vmatprep.subr.bf16.mxu1 %v695_v29 }
  0x1f   :  { %445 = vmatpush1.bf16.msra.mxu0 %v697_v30  ;;  %488 = vmatpush1.bf16.msra.mxu1 %v698_v31 }
  0x20   :  { %446 = vmatprep.subr.bf16.mxu0 %v699_v32  ;;  %489 = vmatprep.subr.bf16.mxu1 %v701_v33 }
  0x23   :  { %447 = vmatpush1.bf16.msra.mxu0 %v703_v34  ;;  %490 = vmatpush1.bf16.msra.mxu1 %v704_v35 }
  0x24   :  { %448 = vmatprep.subr.bf16.mxu0 %v705_v36  ;;  %491 = vmatprep.subr.bf16.mxu1 %v707_v37 }
  0x27   :  { %449 = vmatpush1.bf16.msra.mxu0 %v709_v38  ;;  %492 = vmatpush1.bf16.msra.mxu1 %v710_v39 }
  0x28   :  { %450 = vmatprep.subr.bf16.mxu0 %v711_v40  ;;  %493 = vmatprep.subr.bf16.mxu1 %v713_v41 }
  0x2b   :  { %451 = vmatpush1.bf16.msra.mxu0 %v715_v42  ;;  %494 = vmatpush1.bf16.msra.mxu1 %v716_v43 }
  0x2c   :  { %452 = vmatprep.subr.bf16.mxu0 %v717_v44  ;;  %495 = vmatprep.subr.bf16.mxu1 %v719_v45 }
  0x2f   :  { %453 = vmatpush1.bf16.msra.mxu0 %v721_v47  ;;  %496 = vmatpush1.bf16.msra.mxu1 %v722_v48 }
  0x30   :  { %454 = vmatprep.subr.bf16.mxu0 %v723_v49  ;;  %497 = vmatprep.subr.bf16.mxu1 %v725_v50 }
  0x33   :  { %455 = vmatpush1.bf16.msra.mxu0 %v727_v51  ;;  %498 = vmatpush1.bf16.msra.mxu1 %v728_v52 }
  0x34   :  { %456 = vmatprep.subr.bf16.mxu0 %v729_v53  ;;  %499 = vmatprep.subr.bf16.mxu1 %v731_v54 }
  0x37   :  { %457 = vmatpush1.bf16.msra.mxu0 %v733_v55  ;;  %500 = vmatpush1.bf16.msra.mxu1 %v734_v56 }
  0x38   :  { %458 = vmatprep.subr.bf16.mxu0 %v735_v57  ;;  %501 = vmatprep.subr.bf16.mxu1 %v737_v58 }
  0x3b   :  { %459 = vmatpush1.bf16.msra.mxu0 %v739_v59  ;;  %502 = vmatpush1.bf16.msra.mxu1 %v740_v60 }
  0x3c   :  { %460 = vmatprep.subr.bf16.mxu0 %v741_v61  ;;  %503 = vmatprep.subr.bf16.mxu1 %v743_v62 }
  0x3f   :  { %461 = vmatpush1.bf16.msra.mxu0 %v745_v63  ;;  %504 = vmatpush1.bf16.msra.mxu1 %v746_v0 }
  0x42   :  { %463 = vmatmul.mubr.bf16.vlgmr.msra.gmra.mrb[0].mxu0 %v747_v1  ;;  %506 = vmatmul.mubr.bf16.vlgmr.msra.gmra.mrb[0].mxu1 %v747_v1 }
 0x115   :  { %v464_v13 = vpop.f32.mrb[0].mxu0  ;;  %v507_v14 = vpop.f32.mrb[0].mxu1 }
 0x116   :  { %v565_v15 = vadd.f32 %v548_v9, %v464_v13  ;;  %v567_v16 = vadd.f32 %v556_v10, %v507_v14  ;;  %v466_v17 = vpop.f32.mrb[1].mxu0  ;;  %v509_v18 = vpop.f32.mrb[1].mxu1 }
 0x117   :  { %v566_v19 = vadd.f32 %v552_v11, %v466_v17  ;;  %v568_v20 = vadd.f32 %v560_v12, %v509_v18  ;;  %v468_v21 = vpop.f32.mrb[2].mxu0  ;;  %v511_v22 = vpop.f32.mrb[2].mxu1 }
 0x118   :  { %573 = vst [vmem:[%s998_s3] sm:$0xff] %v565_v15  ;;  %575 = vst [vmem:[%s998_s3 + $0x10] sm:$0xff] %v567_v16  ;;  %v569_v23 = vadd.f32 %v548_v9, %v468_v21  ;;  %v571_v24 = vadd.f32 %v556_v10, %v511_v22  ;;  %v470_v25 = vpop.f32.mrb[3].mxu0  ;;  %v513_v26 = vpop.f32.mrb[3].mxu1 }
 0x119   :  { %574 = vst [vmem:[%s998_s3 + $0x8] sm:$0xff] %v566_v19  ;;  %576 = vst [vmem:[%s998_s3 + $0x18] sm:$0xff] %v568_v20  ;;  %v570_v27 = vadd.f32 %v552_v11, %v470_v25  ;;  %v572_v28 = vadd.f32 %v560_v12, %v513_v26 }
 0x11a   :  { %577 = vst [vmem:[%s998_s3 + $0x20] sm:$0xff] %v569_v23  ;;  %579 = vst [vmem:[%s998_s3 + $0x30] sm:$0xff] %v571_v24 }
 0x11b   :  { %578 = vst [vmem:[%s998_s3 + $0x28] sm:$0xff] %v570_v27  ;;  %580 = vst [vmem:[%s998_s3 + $0x38] sm:$0xff] %v572_v28 }

// kernel: autoencoder_forward.3
= control target key start
LH: loop header
LB: loop body
LE: loop exit
PB: predicated region body
PF: predicated region fallthrough
CT: control target
= control target key end

     0   :  { %8 = vsyncpa [#allocation4], 0  ;;  %s793_s12 = smov [#allocation3]   ;;  %s849_s0 = inlined_call_operand.vmem [shape: bf16[16,512], index: 0, kind: input, shape index: {}]   ;;  %s850_s1 = inlined_call_operand.hbm [shape: bf16[512,256], index: 1, kind: input, shape index: {}]   ;;  %s851_s2 = inlined_call_operand.vmem [shape: f32[1,256], index: 2, kind: input, shape index: {}]   ;;  %s852_s3 = inlined_call_operand.vmem [shape: bf16[16,256], index: 3, kind: output, shape index: {}]  }
   0x1   :  { %s16_s13 = sshll.u32 %s793_s12, 4  ;;  %s769_s16 = scalar_lea.hbm %s850_s1, 8192  ;;  %s17_s13 = int_to_ptr.vmem [resolvable:$true] %s16_s13 }
   0x2   :  { %p770_p0 = scmp.ne.s32.totalorder %s850_s1, %s769_s16  ;;  %p773_p1 = scmp.lt.u32.totalorder %s769_s16, %s850_s1 }
   0x4   :  { %p775_p2 = pnand %p773_p1, %p770_p0 }
   0x6   :  { %778 = shalt.err (!%p775_p2)
}
   0x7   :  { %s779_s21 = scalar_lea.vmem %s17_s13, 8192  ;;  %p784_p4 = scmp.lt.s32.totalorder %s17_s13, %s17_s13 }
   0x8   :  { %p780_p3 = scmp.ne.s32.totalorder %s17_s13, %s779_s21  ;;  %p785_p5 = scmp.lt.s32.totalorder %s779_s21, %s779_s21 }
   0xa   :  { %p786_p6 = por %p785_p5, %p784_p4 }
   0xc   :  { %p787_p7 = pnand %p786_p6, %p780_p3 }
   0xe   :  { %790 = shalt.err (!%p787_p7)
}
   0xf   :  { %s794_s22 = smov 128   ;;  %s795_s23 = smov 8  }
  0x10   :  { %22 = dma.hbm_to_vmem [thread:$0]  %s850_s1, 8192, %s17_s13, [#allocation4], %s794_s22, %s794_s22, %s795_s23  }
  0x11   :  { %791 = dma.done.wait [#allocation4], 8192  }
  0x12   :  { %792 = vsyncadd [#allocation4], 4294959104  ;;  %v667_v0 = vld [vmem:[#allocation3 + $0x4] ss:$8 sps:$4 sm:$0xff]   ;;  %v671_v2 = vld [vmem:[#allocation3] ss:$8 sps:$4 sm:$0xff]  }
  0x13   :  { %v669_v1 = vld [vmem:[#allocation3 + $0x104] ss:$8 sps:$4 sm:$0xff]   ;;  %448 = vmatprep.subr.bf16.mxu1 %v667_v0  ;;  %v672_v3 = vld [vmem:[#allocation3 + $0x100] ss:$8 sps:$4 sm:$0xff]   ;;  %v673_v4 = vld [vmem:[#allocation3 + $0x14] ss:$8 sps:$4 sm:$0xff]  }
  0x14   :  { %491 = vmatprep.subr.bf16.mxu0 %v669_v1  ;;  %449 = vmatpush1.bf16.msra.mxu1 %v671_v2  ;;  %v675_v5 = vld [vmem:[#allocation3 + $0x114] ss:$8 sps:$4 sm:$0xff]   ;;  %v677_v6 = vld [vmem:[#allocation3 + $0x10] ss:$8 sps:$4 sm:$0xff]   ;;  %v679_v8 = vld [vmem:[#allocation3 + $0x24] ss:$8 sps:$4 sm:$0xff]  }
  0x15   :  { %492 = vmatpush1.bf16.msra.mxu0 %v672_v3  ;;  %450 = vmatprep.subr.bf16.mxu1 %v673_v4  ;;  %v678_v7 = vld [vmem:[#allocation3 + $0x110] ss:$8 sps:$4 sm:$0xff]   ;;  %v681_v9 = vld [vmem:[#allocation3 + $0x124] ss:$8 sps:$4 sm:$0xff]   ;;  %v683_v10 = vld [vmem:[#allocation3 + $0x20] ss:$8 sps:$4 sm:$0xff]   ;;  %v551_v4 = vlaneseq }
  0x16   :  { %493 = vmatprep.subr.bf16.mxu0 %v675_v5  ;;  %v684_v11 = vld [vmem:[#allocation3 + $0x120] ss:$8 sps:$4 sm:$0xff]   ;;  %v685_v12 = vld [vmem:[#allocation3 + $0x34] ss:$8 sps:$4 sm:$0xff]   ;;  %v689_v14 = vld [vmem:[#allocation3 + $0x30] ss:$8 sps:$4 sm:$0xff]  }
  0x17   :  { %v687_v13 = vld [vmem:[#allocation3 + $0x134] ss:$8 sps:$4 sm:$0xff]   ;;  %v690_v15 = vld [vmem:[#allocation3 + $0x130] ss:$8 sps:$4 sm:$0xff]   ;;  %v691_v16 = vld [vmem:[#allocation3 + $0x44] ss:$8 sps:$4 sm:$0xff]  }
  0x18   :  { %451 = vmatpush1.bf16.msra.mxu1 %v677_v6  ;;  %v693_v17 = vld [vmem:[#allocation3 + $0x144] ss:$8 sps:$4 sm:$0xff]   ;;  %v695_v18 = vld [vmem:[#allocation3 + $0x40] ss:$8 sps:$4 sm:$0xff]   ;;  %v697_v20 = vld [vmem:[#allocation3 + $0x54] ss:$8 sps:$4 sm:$0xff]  }
  0x19   :  { %494 = vmatpush1.bf16.msra.mxu0 %v678_v7  ;;  %452 = vmatprep.subr.bf16.mxu1 %v679_v8  ;;  %v696_v19 = vld [vmem:[#allocation3 + $0x140] ss:$8 sps:$4 sm:$0xff]   ;;  %v699_v21 = vld [vmem:[#allocation3 + $0x154] ss:$8 sps:$4 sm:$0xff]   ;;  %v701_v22 = vld [vmem:[#allocation3 + $0x50] ss:$8 sps:$4 sm:$0xff]  }
  0x1a   :  { %495 = vmatprep.subr.bf16.mxu0 %v681_v9  ;;  %v702_v23 = vld [vmem:[#allocation3 + $0x150] ss:$8 sps:$4 sm:$0xff]   ;;  %v703_v24 = vld [vmem:[#allocation3 + $0x64] ss:$8 sps:$4 sm:$0xff]   ;;  %v707_v26 = vld [vmem:[#allocation3 + $0x60] ss:$8 sps:$4 sm:$0xff]  }
  0x1b   :  { %v705_v25 = vld [vmem:[#allocation3 + $0x164] ss:$8 sps:$4 sm:$0xff]   ;;  %v708_v27 = vld [vmem:[#allocation3 + $0x160] ss:$8 sps:$4 sm:$0xff]   ;;  %v709_v28 = vld [vmem:[#allocation3 + $0x74] ss:$8 sps:$4 sm:$0xff]  }
  0x1c   :  { %453 = vmatpush1.bf16.msra.mxu1 %v683_v10  ;;  %v711_v29 = vld [vmem:[#allocation3 + $0x174] ss:$8 sps:$4 sm:$0xff]   ;;  %v713_v30 = vld [vmem:[#allocation3 + $0x70] ss:$8 sps:$4 sm:$0xff]   ;;  %v715_v32 = vld [vmem:[#allocation3 + $0x84] ss:$8 sps:$4 sm:$0xff]  }
  0x1d   :  { %496 = vmatpush1.bf16.msra.mxu0 %v684_v11  ;;  %454 = vmatprep.subr.bf16.mxu1 %v685_v12  ;;  %v714_v31 = vld [vmem:[#allocation3 + $0x170] ss:$8 sps:$4 sm:$0xff]   ;;  %v717_v33 = vld [vmem:[#allocation3 + $0x184] ss:$8 sps:$4 sm:$0xff]   ;;  %v719_v34 = vld [vmem:[#allocation3 + $0x80] ss:$8 sps:$4 sm:$0xff]  }
  0x1e   :  { %497 = vmatprep.subr.bf16.mxu0 %v687_v13  ;;  %v720_v35 = vld [vmem:[#allocation3 + $0x180] ss:$8 sps:$4 sm:$0xff]   ;;  %v721_v36 = vld [vmem:[#allocation3 + $0x94] ss:$8 sps:$4 sm:$0xff]   ;;  %v725_v38 = vld [vmem:[#allocation3 + $0x90] ss:$8 sps:$4 sm:$0xff]  }
  0x1f   :  { %v723_v37 = vld [vmem:[#allocation3 + $0x194] ss:$8 sps:$4 sm:$0xff]   ;;  %v726_v39 = vld [vmem:[#allocation3 + $0x190] ss:$8 sps:$4 sm:$0xff]   ;;  %v727_v40 = vld [vmem:[#allocation3 + $0xa4] ss:$8 sps:$4 sm:$0xff]  }
  0x20   :  { %455 = vmatpush1.bf16.msra.mxu1 %v689_v14  ;;  %v729_v41 = vld [vmem:[#allocation3 + $0x1a4] ss:$8 sps:$4 sm:$0xff]   ;;  %v731_v42 = vld [vmem:[#allocation3 + $0xa0] ss:$8 sps:$4 sm:$0xff]   ;;  %v733_v44 = vld [vmem:[#allocation3 + $0xb4] ss:$8 sps:$4 sm:$0xff]  }
  0x21   :  { %498 = vmatpush1.bf16.msra.mxu0 %v690_v15  ;;  %456 = vmatprep.subr.bf16.mxu1 %v691_v16  ;;  %v732_v43 = vld [vmem:[#allocation3 + $0x1a0] ss:$8 sps:$4 sm:$0xff]   ;;  %v735_v45 = vld [vmem:[#allocation3 + $0x1b4] ss:$8 sps:$4 sm:$0xff]   ;;  %v737_v46 = vld [vmem:[#allocation3 + $0xb0] ss:$8 sps:$4 sm:$0xff]  }
  0x22   :  { %499 = vmatprep.subr.bf16.mxu0 %v693_v17  ;;  %v765_v47 = vld [vmem:[%s849_s0 + $0x4] ss:$16 sps:$4 sm:$0xff]   ;;  %v738_v48 = vld [vmem:[#allocation3 + $0x1b0] ss:$8 sps:$4 sm:$0xff]   ;;  %v768_v51 = vld [vmem:[%s849_s0 + $0xc] ss:$16 sps:$4 sm:$0xff]  }
  0x23   :  { %v739_v49 = vld [vmem:[#allocation3 + $0xc4] ss:$8 sps:$4 sm:$0xff]   ;;  %480 = vmatprep.mubr.bf16.mxu1 %v765_v47  ;;  %523 = vmatprep.mubr.bf16.mxu0 %v768_v51  ;;  %v743_v52 = vld [vmem:[#allocation3 + $0xc0] ss:$8 sps:$4 sm:$0xff]   ;;  %v745_v54 = vld [vmem:[#allocation3 + $0xd4] ss:$8 sps:$4 sm:$0xff]  }
  0x24   :  { %457 = vmatpush1.bf16.msra.mxu1 %v695_v18  ;;  %v741_v50 = vld [vmem:[#allocation3 + $0x1c4] ss:$8 sps:$4 sm:$0xff]   ;;  %v744_v53 = vld [vmem:[#allocation3 + $0x1c0] ss:$8 sps:$4 sm:$0xff]   ;;  %v747_v55 = vld [vmem:[#allocation3 + $0x1d4] ss:$8 sps:$4 sm:$0xff]  }
  0x25   :  { %500 = vmatpush1.bf16.msra.mxu0 %v696_v19  ;;  %458 = vmatprep.subr.bf16.mxu1 %v697_v20  ;;  %v749_v56 = vld [vmem:[#allocation3 + $0xd0] ss:$8 sps:$4 sm:$0xff]   ;;  %v751_v58 = vld [vmem:[#allocation3 + $0xe4] ss:$8 sps:$4 sm:$0xff]   ;;  %v755_v60 = vld [vmem:[#allocation3 + $0xe0] ss:$8 sps:$4 sm:$0xff]  }
  0x26   :  { %501 = vmatprep.subr.bf16.mxu0 %v699_v21  ;;  %v750_v57 = vld [vmem:[#allocation3 + $0x1d0] ss:$8 sps:$4 sm:$0xff]   ;;  %v753_v59 = vld [vmem:[#allocation3 + $0x1e4] ss:$8 sps:$4 sm:$0xff]   ;;  %v756_v61 = vld [vmem:[#allocation3 + $0x1e0] ss:$8 sps:$4 sm:$0xff]  }
  0x27   :  { %v757_v62 = vld [vmem:[#allocation3 + $0xf4] ss:$8 sps:$4 sm:$0xff]   ;;  %v761_v0 = vld [vmem:[#allocation3 + $0xf0] ss:$8 sps:$4 sm:$0xff]   ;;  %v552_v5 = vshrl.u32 %v551_v4, 7 }
  0x28   :  { %459 = vmatpush1.bf16.msra.mxu1 %v701_v22  ;;  %v759_v63 = vld [vmem:[#allocation3 + $0x1f4] ss:$8 sps:$4 sm:$0xff]   ;;  %v762_v1 = vld [vmem:[#allocation3 + $0x1f0] ss:$8 sps:$4 sm:$0xff]   ;;  %v549_v7 = vld [vmem:[%s851_s2] sm:$0x3] }
  0x29   :  { %502 = vmatpush1.bf16.msra.mxu0 %v702_v23  ;;  %460 = vmatprep.subr.bf16.mxu1 %v703_v24  ;;  %v763_v2 = vld [vmem:[%s849_s0] ss:$16 sps:$4 sm:$0xff]   ;;  %v766_v3 = vld [vmem:[%s849_s0 + $0x8] ss:$16 sps:$4 sm:$0xff]   ;;  %v553_v6 = vsub.s32 0, %v552_v5  ;;  %v557_v8 = vsub.s32 1, %v552_v5 }
  0x2a   :  { %503 = vmatprep.subr.bf16.mxu0 %v705_v25 }
  0x2b   :  { %v554_v9 = vrot.slane %v549_v7, %v553_v6  ;;  %v558_v12 = vrot.slane %v549_v7, %v557_v8 }
  0x2c   :  { %461 = vmatpush1.bf16.msra.mxu1 %v707_v26 }
  0x2d   :  { %504 = vmatpush1.bf16.msra.mxu0 %v708_v27  ;;  %462 = vmatprep.subr.bf16.mxu1 %v709_v28 }
  0x2e   :  { %505 = vmatprep.subr.bf16.mxu0 %v711_v29 }
  0x30   :  { %463 = vmatpush1.bf16.msra.mxu1 %v713_v30 }
  0x31   :  { %506 = vmatpush1.bf16.msra.mxu0 %v714_v31  ;;  %464 = vmatprep.subr.bf16.mxu1 %v715_v32 }
  0x32   :  { %507 = vmatprep.subr.bf16.mxu0 %v717_v33 }
  0x34   :  { %465 = vmatpush1.bf16.msra.mxu1 %v719_v34 }
  0x35   :  { %508 = vmatpush1.bf16.msra.mxu0 %v720_v35  ;;  %466 = vmatprep.subr.bf16.mxu1 %v721_v36 }
  0x36   :  { %509 = vmatprep.subr.bf16.mxu0 %v723_v37 }
  0x38   :  { %467 = vmatpush1.bf16.msra.mxu1 %v725_v38 }
  0x39   :  { %510 = vmatpush1.bf16.msra.mxu0 %v726_v39  ;;  %468 = vmatprep.subr.bf16.mxu1 %v727_v40 }
  0x3a   :  { %511 = vmatprep.subr.bf16.mxu0 %v729_v41 }
  0x3c   :  { %469 = vmatpush1.bf16.msra.mxu1 %v731_v42 }
  0x3d   :  { %512 = vmatpush1.bf16.msra.mxu0 %v732_v43  ;;  %470 = vmatprep.subr.bf16.mxu1 %v733_v44 }
  0x3e   :  { %513 = vmatprep.subr.bf16.mxu0 %v735_v45 }
  0x40   :  { %471 = vmatpush1.bf16.msra.mxu1 %v737_v46 }
  0x41   :  { %514 = vmatpush1.bf16.msra.mxu0 %v738_v48  ;;  %472 = vmatprep.subr.bf16.mxu1 %v739_v49 }
  0x42   :  { %515 = vmatprep.subr.bf16.mxu0 %v741_v50 }
  0x44   :  { %473 = vmatpush1.bf16.msra.mxu1 %v743_v52 }
  0x45   :  { %516 = vmatpush1.bf16.msra.mxu0 %v744_v53  ;;  %474 = vmatprep.subr.bf16.mxu1 %v745_v54 }
  0x46   :  { %517 = vmatprep.subr.bf16.mxu0 %v747_v55 }
  0x48   :  { %475 = vmatpush1.bf16.msra.mxu1 %v749_v56 }
  0x49   :  { %518 = vmatpush1.bf16.msra.mxu0 %v750_v57  ;;  %476 = vmatprep.subr.bf16.mxu1 %v751_v58 }
  0x4a   :  { %519 = vmatprep.subr.bf16.mxu0 %v753_v59 }
  0x4c   :  { %477 = vmatpush1.bf16.msra.mxu1 %v755_v60 }
  0x4d   :  { %520 = vmatpush1.bf16.msra.mxu0 %v756_v61  ;;  %478 = vmatprep.subr.bf16.mxu1 %v757_v62 }
  0x4e   :  { %521 = vmatprep.subr.bf16.mxu0 %v759_v63 }
  0x50   :  { %479 = vmatpush1.bf16.msra.mxu1 %v761_v0 }
  0x51   :  { %522 = vmatpush1.bf16.msra.mxu0 %v762_v1 }
  0x53   :  { %481 = vmatmul.mubr.bf16.vlgmr.msra.gmra.mrb[0].mxu1 %v763_v2 }
  0x54   :  { %524 = vmatmul.mubr.bf16.vlgmr.msra.gmra.mrb[0].mxu0 %v766_v3 }
 0x126   :  { %v482_v10 = vpop.f32.mrb[0].mxu1 }
 0x127   :  { %v525_v11 = vpop.f32.mrb[0].mxu0  ;;  %v484_v14 = vpop.f32.mrb[1].mxu1 }
 0x128   :  { %v526_v13 = vadd.f32 %v525_v11, %v482_v10  ;;  %v527_v15 = vpop.f32.mrb[1].mxu0  ;;  %v486_v17 = vpop.f32.mrb[2].mxu1 }
 0x129   :  { %v528_v16 = vadd.f32 %v527_v15, %v484_v14  ;;  %v529_v18 = vpop.f32.mrb[2].mxu0  ;;  %v488_v21 = vpop.f32.mrb[3].mxu1 }
 0x12a   :  { %v561_v19 = vadd.f32 %v554_v9, %v526_v13  ;;  %v530_v20 = vadd.f32 %v529_v18, %v486_v17  ;;  %v531_v22 = vpop.f32.mrb[3].mxu0 }
 0x12b   :  { %v562_v23 = vadd.f32 %v558_v12, %v528_v16  ;;  %v532_v24 = vadd.f32 %v531_v22, %v488_v21 }
 0x12c   :  { %v565_v25 = vmax.f32 %v561_v19, 0.0  ;;  %v563_v26 = vadd.f32 %v554_v9, %v530_v20 }
 0x12d   :  { %v566_v27 = vmax.f32 %v562_v23, 0.0  ;;  %v564_v28 = vadd.f32 %v558_v12, %v532_v24 }
 0x12e   :  { %v567_v29 = vmax.f32 %v563_v26, 0.0 }
 0x12f   :  { %v658_v30 = vpack.c.bf16 %v566_v27, %v565_v25  ;;  %v568_v31 = vmax.f32 %v564_v28, 0.0 }
 0x131   :  { %581 = vst [vmem:[%s852_s3] sm:$0xff] %v658_v30  ;;  %v659_v32 = vpack.c.bf16 %v568_v31, %v567_v29 }
 0x133   :  { %582 = vst [vmem:[%s852_s3 + $0x8] sm:$0xff] %v659_v32 }
 0x134   :  { %587 = vsyncpa [#allocation4], 1 }

// kernel: autoencoder_forward.4
= control target key start
LH: loop header
LB: loop body
LE: loop exit
PB: predicated region body
PF: predicated region fallthrough
CT: control target
= control target key end

     0   :  { %v832_v1 = vmov 0.0   ;;  %vm833_vm0 = vmmov 0   ;;  %s1082_s1 = inlined_call_operand.vmem [shape: bf16[256,128], index: 1, kind: input, shape index: {}]   ;;  %s1083_s0 = inlined_call_operand.vmem [shape: bf16[16,256], index: 0, kind: input, shape index: {}]   ;;  %s1084_s3 = inlined_call_operand.vmem [shape: bf16[128,128], index: 3, kind: input, shape index: {}]   ;;  %s1085_s5 = inlined_call_operand.vmem [shape: bf16[128,128], index: 5, kind: input, shape index: {}]   ;;  %s1086_s2 = inlined_call_operand.vmem [shape: f32[1,128], index: 2, kind: input, shape index: {}]   ;;  %s1087_s7 = inlined_call_operand.vmem [shape: bf16[128,256], index: 7, kind: input, shape index: {}]   ;;  %s1088_s4 = inlined_call_operand.vmem [shape: f32[1,128], index: 4, kind: input, shape index: {}]   ;;  %s1089_s9 = inlined_call_operand.vmem [shape: f32[16,128], index: 9, kind: output, shape index: {0}]   ;;  %s1090_s6 = inlined_call_operand.vmem [shape: f32[1,128], index: 6, kind: input, shape index: {}]   ;;  %s1091_s8 = inlined_call_operand.vmem [shape: f32[1,256], index: 8, kind: input, shape index: {}]   ;;  %s1092_s10 = inlined_call_operand.vmem [shape: bf16[16,256], index: 10, kind: output, shape index: {1}]  }
   0x1   :  { %v773_v0 = vld [vmem:[%s1082_s1 + $0x40] sm:$0xff]   ;;  %730 = vmatprep.subr.bf16.mxu1 %v832_v1  ;;  %v775_v3 = vld [vmem:[%s1082_s1 + $0x48] sm:$0xff]   ;;  %v777_v5 = vld [vmem:[%s1082_s1 + $0x50] sm:$0xff]   ;;  %746 = vmatprep.mubr.msk.bf16.mxu1 %vm833_vm0, %v832_v1 }
   0x2   :  { %v774_v2 = vld [vmem:[%s1082_s1] sm:$0xff]   ;;  %690 = vmatprep.subr.bf16.mxu0 %v773_v0  ;;  %v776_v4 = vld [vmem:[%s1082_s1 + $0x8] sm:$0xff]   ;;  %v778_v6 = vld [vmem:[%s1082_s1 + $0x10] sm:$0xff]  }
   0x3   :  { %691 = vmatpush3.bf16.msra.mxu0 %v774_v2  ;;  %v779_v7 = vld [vmem:[%s1082_s1 + $0x58] sm:$0xff]   ;;  %v781_v9 = vld [vmem:[%s1082_s1 + $0x60] sm:$0xff]   ;;  %v783_v11 = vld [vmem:[%s1082_s1 + $0x68] sm:$0xff]  }
   0x4   :  { %692 = vmatprep.subr.bf16.mxu0 %v775_v3  ;;  %v780_v8 = vld [vmem:[%s1082_s1 + $0x18] sm:$0xff]   ;;  %v782_v10 = vld [vmem:[%s1082_s1 + $0x20] sm:$0xff]   ;;  %v784_v12 = vld [vmem:[%s1082_s1 + $0x28] sm:$0xff]  }
   0x5   :  { %v791_v13 = vld [vmem:[%s1083_s0 + $0x4] ss:$8 sps:$4 sm:$0xff]   ;;  %v785_v15 = vld [vmem:[%s1082_s1 + $0x70] sm:$0xff]   ;;  %v787_v18 = vld [vmem:[%s1082_s1 + $0x78] sm:$0xff]  }
   0x6   :  { %v792_v14 = vld [vmem:[%s1084_s3] sm:$0xff]   ;;  %214 = vmatprep.mubr.bf16.mxu0 %v791_v13  ;;  %v793_v16 = vld [vmem:[%s1084_s3 + $0x8] sm:$0xff]   ;;  %v786_v17 = vld [vmem:[%s1082_s1 + $0x30] sm:$0xff]  }
   0x7   :  { %693 = vmatpush3.bf16.msra.mxu0 %v776_v4  ;;  %731 = vmatpush3.bf16.msra.mxu1 %v792_v14  ;;  %v794_v19 = vld [vmem:[%s1084_s3 + $0x10] sm:$0xff]   ;;  %v788_v20 = vld [vmem:[%s1082_s1 + $0x38] sm:$0xff]   ;;  %v789_v22 = vld [vmem:[%s1083_s0] ss:$8 sps:$4 sm:$0xff]  }
   0x8   :  { %694 = vmatprep.subr.bf16.mxu0 %v777_v5  ;;  %732 = vmatprep.subr.bf16.mxu1 %v832_v1  ;;  %v795_v21 = vld [vmem:[%s1084_s3 + $0x18] sm:$0xff]   ;;  %v796_v23 = vld [vmem:[%s1084_s3 + $0x20] sm:$0xff]   ;;  %v797_v24 = vld [vmem:[%s1084_s3 + $0x28] sm:$0xff]  }
   0x9   :  { %v798_v25 = vld [vmem:[%s1084_s3 + $0x30] sm:$0xff]   ;;  %v799_v26 = vld [vmem:[%s1084_s3 + $0x38] sm:$0xff]   ;;  %v800_v27 = vld [vmem:[%s1085_s5] sm:$0xff]  }
   0xa   :  { %v801_v28 = vld [vmem:[%s1085_s5 + $0x8] sm:$0xff]   ;;  %v802_v29 = vld [vmem:[%s1085_s5 + $0x10] sm:$0xff]   ;;  %v803_v30 = vld [vmem:[%s1085_s5 + $0x18] sm:$0xff]  }
   0xb   :  { %695 = vmatpush3.bf16.msra.mxu0 %v778_v6  ;;  %733 = vmatpush3.bf16.msra.mxu1 %v793_v16  ;;  %v804_v31 = vld [vmem:[%s1085_s5 + $0x20] sm:$0xff]   ;;  %v805_v32 = vld [vmem:[%s1085_s5 + $0x28] sm:$0xff]   ;;  %v806_v45 = vld [vmem:[%s1085_s5 + $0x30] sm:$0xff]  }
   0xc   :  { %696 = vmatprep.subr.bf16.mxu0 %v779_v7  ;;  %734 = vmatprep.subr.bf16.mxu1 %v832_v1  ;;  %v633_v34 = vld [vmem:[%s1086_s2] ss:$0 sm:$0xff]  ;;  %v807_v46 = vld [vmem:[%s1085_s5 + $0x38] sm:$0xff]   ;;  %v810_v48 = vld [vmem:[%s1087_s7 + $0x4] ss:$8 sps:$4 sm:$0xff]   ;;  %v834_v7 = vmov 0  }
   0xd   :  { %v808_v47 = vld [vmem:[%s1087_s7] ss:$8 sps:$4 sm:$0xff]   ;;  %v813_v49 = vld [vmem:[%s1087_s7 + $0x14] ss:$8 sps:$4 sm:$0xff]   ;;  %v811_v50 = vld [vmem:[%s1087_s7 + $0x10] ss:$8 sps:$4 sm:$0xff]  }
   0xe   :  { %v816_v51 = vld [vmem:[%s1087_s7 + $0x24] ss:$8 sps:$4 sm:$0xff]   ;;  %v814_v52 = vld [vmem:[%s1087_s7 + $0x20] ss:$8 sps:$4 sm:$0xff]   ;;  %v819_v53 = vld [vmem:[%s1087_s7 + $0x34] ss:$8 sps:$4 sm:$0xff]  }
   0xf   :  { %697 = vmatpush3.bf16.msra.mxu0 %v780_v8  ;;  %735 = vmatpush3.bf16.msra.mxu1 %v794_v19  ;;  %v817_v54 = vld [vmem:[%s1087_s7 + $0x30] ss:$8 sps:$4 sm:$0xff]   ;;  %v822_v55 = vld [vmem:[%s1087_s7 + $0x44] ss:$8 sps:$4 sm:$0xff]   ;;  %v820_v56 = vld [vmem:[%s1087_s7 + $0x40] ss:$8 sps:$4 sm:$0xff]  }
  0x10   :  { %698 = vmatprep.subr.bf16.mxu0 %v781_v9  ;;  %736 = vmatprep.subr.bf16.mxu1 %v832_v1  ;;  %v825_v57 = vld [vmem:[%s1087_s7 + $0x54] ss:$8 sps:$4 sm:$0xff]   ;;  %v823_v58 = vld [vmem:[%s1087_s7 + $0x50] ss:$8 sps:$4 sm:$0xff]   ;;  %v652_v59 = vld [vmem:[%s1088_s4] ss:$0 sm:$0xff] }
  0x11   :  { %v828_v3 = vld [vmem:[%s1087_s7 + $0x64] ss:$8 sps:$4 sm:$0xff]   ;;  %v826_v4 = vld [vmem:[%s1087_s7 + $0x60] ss:$8 sps:$4 sm:$0xff]   ;;  %v831_v5 = vld [vmem:[%s1087_s7 + $0x74] ss:$8 sps:$4 sm:$0xff]  }
  0x12   :  { %v829_v6 = vld [vmem:[%s1087_s7 + $0x70] ss:$8 sps:$4 sm:$0xff]   ;;  %v661_v8 = vld [vmem:[%s1090_s6] ss:$0 sm:$0xff] }
  0x13   :  { %699 = vmatpush3.bf16.msra.mxu0 %v782_v10  ;;  %737 = vmatpush3.bf16.msra.mxu1 %v795_v21  ;;  %v472_v21 = vld [vmem:[%s1091_s8] sm:$0x3] }
  0x14   :  { %700 = vmatprep.subr.bf16.mxu0 %v783_v11  ;;  %738 = vmatprep.subr.bf16.mxu1 %v832_v1 }
  0x17   :  { %701 = vmatpush3.bf16.msra.mxu0 %v784_v12  ;;  %739 = vmatpush3.bf16.msra.mxu1 %v796_v23 }
  0x18   :  { %702 = vmatprep.subr.bf16.mxu0 %v785_v15  ;;  %740 = vmatprep.subr.bf16.mxu1 %v832_v1 }
  0x1b   :  { %703 = vmatpush3.bf16.msra.mxu0 %v786_v17  ;;  %741 = vmatpush3.bf16.msra.mxu1 %v797_v24 }
  0x1c   :  { %704 = vmatprep.subr.bf16.mxu0 %v787_v18  ;;  %742 = vmatprep.subr.bf16.mxu1 %v832_v1  ;;  %v474_v18 = vlaneseq }
  0x1e   :  { %v475_v19 = vshrl.u32 %v474_v18, 7 }
  0x1f   :  { %705 = vmatpush3.bf16.msra.mxu0 %v788_v20  ;;  %743 = vmatpush3.bf16.msra.mxu1 %v798_v25 }
  0x20   :  { %750 = vmatprep.subr.bf16.mxu0 %v832_v1  ;;  %744 = vmatprep.subr.bf16.mxu1 %v832_v1  ;;  %v476_v20 = vsub.s32 0, %v475_v19 }
  0x22   :  { %215 = vmatmul.mubr.bf16.vlgmr.msra.gmra.mrb[0].mxu0 %v789_v22  ;;  %v480_v22 = vsub.s32 1, %v475_v19  ;;  %v477_v23 = vrot.slane %v472_v21, %v476_v20 }
  0x23   :  { %745 = vmatpush3.bf16.msra.mxu1 %v799_v26  ;;  %766 = vmatprep.mubr.msk.bf16.mxu0 %vm833_vm0, %v832_v1 }
  0x24   :  { %751 = vmatpush3.bf16.msra.mxu0 %v800_v27  ;;  %564 = vmatprep.subr.bf16.mxu1 %v810_v48  ;;  %v481_v24 = vrot.slane %v472_v21, %v480_v22 }
  0x25   :  { %752 = vmatprep.subr.bf16.mxu0 %v832_v1 }
  0x28   :  { %753 = vmatpush3.bf16.msra.mxu0 %v801_v28 }
  0x29   :  { %754 = vmatprep.subr.bf16.mxu0 %v832_v1 }
  0x2c   :  { %755 = vmatpush3.bf16.msra.mxu0 %v802_v29 }
  0x2d   :  { %756 = vmatprep.subr.bf16.mxu0 %v832_v1 }
  0x30   :  { %757 = vmatpush3.bf16.msra.mxu0 %v803_v30 }
  0x31   :  { %758 = vmatprep.subr.bf16.mxu0 %v832_v1 }
  0x34   :  { %759 = vmatpush3.bf16.msra.mxu0 %v804_v31 }
  0x35   :  { %760 = vmatprep.subr.bf16.mxu0 %v832_v1 }
  0x38   :  { %761 = vmatpush3.bf16.msra.mxu0 %v805_v32 }
  0x39   :  { %762 = vmatprep.subr.bf16.mxu0 %v832_v1 }
  0x3c   :  { %763 = vmatpush3.bf16.msra.mxu0 %v806_v45 }
  0x3d   :  { %764 = vmatprep.subr.bf16.mxu0 %v832_v1 }
  0x40   :  { %765 = vmatpush3.bf16.msra.mxu0 %v807_v46 }
  0xf5   :  { %v706_v33 = vpop.f32.mrb[0].mxu0 }
  0xf6   :  { %v707_v35 = vpop.f32.mrb[1].mxu0 }
  0xf7   :  { %v708_v36 = vadd.f32 %v707_v35, %v706_v33  ;;  %v709_v37 = vpop.f32.mrb[2].mxu0 }
  0xf8   :  { %v710_v38 = vpop.f32.mrb[3].mxu0 }
  0xf9   :  { %v217_v39 = vadd.f32 %v708_v36, %v633_v34  ;;  %v711_v40 = vadd.f32 %v710_v38, %v709_v37 }
  0xfb   :  { %v220_v41 = vadd.f32 %v711_v40, %v633_v34  ;;  %v223_v42 = vmax.f32 %v217_v39, 0.0 }
  0xfd   :  { %v224_v43 = vmax.f32 %v220_v41, 0.0 }
  0xff   :  { %v225_v44 = vpack.c.bf16 %v224_v43, %v223_v42 }
 0x101   :  { %747 = vmatmul.mubr.bf16.vlgmr.msra.gmra.mrb[0].mxu1 %v225_v44 }
 0x102   :  { %565 = vmatpush1.bf16.msra.mxu1 %v808_v47  ;;  %596 = vmatprep.mubr.bf16.mxu1 %v834_v7 }
 0x103   :  { %566 = vmatprep.subr.bf16.mxu1 %v813_v49 }
 0x106   :  { %567 = vmatpush1.bf16.msra.mxu1 %v811_v50 }
 0x107   :  { %568 = vmatprep.subr.bf16.mxu1 %v816_v51 }
 0x10a   :  { %569 = vmatpush1.bf16.msra.mxu1 %v814_v52 }
 0x10b   :  { %570 = vmatprep.subr.bf16.mxu1 %v819_v53 }
 0x10e   :  { %571 = vmatpush1.bf16.msra.mxu1 %v817_v54 }
 0x10f   :  { %572 = vmatprep.subr.bf16.mxu1 %v822_v55 }
 0x112   :  { %573 = vmatpush1.bf16.msra.mxu1 %v820_v56 }
 0x113   :  { %574 = vmatprep.subr.bf16.mxu1 %v825_v57 }
 0x116   :  { %575 = vmatpush1.bf16.msra.mxu1 %v823_v58 }
 0x117   :  { %576 = vmatprep.subr.bf16.mxu1 %v828_v3 }
 0x11a   :  { %577 = vmatpush1.bf16.msra.mxu1 %v826_v4 }
 0x11b   :  { %578 = vmatprep.subr.bf16.mxu1 %v831_v5 }
 0x11e   :  { %579 = vmatpush1.bf16.msra.mxu1 %v829_v6 }
 0x1d4   :  { %v331_v60 = vpop.f32.mrb[0].mxu1 }
 0x1d5   :  { %v332_v61 = vadd.f32 %v652_v59, %v331_v60  ;;  %v748_v62 = vpop.f32.mrb[1].mxu1 }
 0x1d6   :  { %v334_v63 = vpop.f32.mrb[2].mxu1 }
 0x1d7   :  { %338 = vst [vmem:[%s1089_s9] sm:$0xff] %v332_v61  ;;  %v335_v0 = vadd.f32 %v652_v59, %v334_v63  ;;  %v749_v1 = vpop.f32.mrb[3].mxu1 }
 0x1d9   :  { %339 = vst [vmem:[%s1089_s9 + $0x8] sm:$0xff] %v335_v0  ;;  %v340_v2 = vpack.c.bf16 %v335_v0, %v332_v61 }
 0x1db   :  { %767 = vmatmul.mubr.bf16.vlgmr.msra.gmra.mrb[4].mxu0 %v340_v2 }
 0x2ae   :  { %v446_v9 = vpop.f32.mrb[4].mxu0 }
 0x2af   :  { %v447_v10 = vadd.f32 %v661_v8, %v446_v9  ;;  %v768_v11 = vpop.f32.mrb[5].mxu0 }
 0x2b0   :  { %v449_v12 = vpop.f32.mrb[6].mxu0 }
 0x2b1   :  { %v450_v13 = vadd.f32 %v661_v8, %v449_v12  ;;  %v769_v14 = vpop.f32.mrb[7].mxu0  ;;  %v453_v15 = vmax.f32 %v447_v10, 0.0 }
 0x2b3   :  { %v454_v16 = vmax.f32 %v450_v13, 0.0 }
 0x2b5   :  { %v455_v17 = vpack.c.bf16 %v454_v16, %v453_v15 }
 0x2b7   :  { %597 = vmatmul.mubr.bf16.vlgmr.msra.gmra.mrb[4].mxu1 %v455_v17 }
 0x38a   :  { %v598_v25 = vpop.f32.mrb[4].mxu1 }
 0x38b   :  { %v599_v26 = vadd.f32 %v598_v25, %v477_v23  ;;  %v600_v27 = vpop.f32.mrb[5].mxu1 }
 0x38c   :  { %v601_v28 = vadd.f32 %v600_v27, %v481_v24  ;;  %v602_v29 = vpop.f32.mrb[6].mxu1 }
 0x38d   :  { %v607_v30 = vmax.f32 %v599_v26, 0.0  ;;  %v603_v31 = vadd.f32 %v602_v29, %v477_v23  ;;  %v604_v32 = vpop.f32.mrb[7].mxu1 }
 0x38e   :  { %v608_v33 = vmax.f32 %v601_v28, 0.0  ;;  %v605_v34 = vadd.f32 %v604_v32, %v481_v24 }
 0x38f   :  { %v609_v35 = vmax.f32 %v603_v31, 0.0 }
 0x390   :  { %v688_v36 = vpack.c.bf16 %v608_v33, %v607_v30  ;;  %v610_v37 = vmax.f32 %v605_v34, 0.0 }
 0x392   :  { %623 = vst [vmem:[%s1092_s10] sm:$0xff] %v688_v36  ;;  %v689_v38 = vpack.c.bf16 %v610_v37, %v609_v35 }
 0x394   :  { %624 = vst [vmem:[%s1092_s10 + $0x8] sm:$0xff] %v689_v38 }

</bundles_post_ra>
